<compile_context>
chip_gen: v7x
topology: tpu7x:2x2x1
jax: 0.10.0
libtpu: 0.0.40
codegen_flags: <defaults>
</compile_context>

<pallas_src>
import functools

import jax
import jax.numpy as jnp
from jax import lax
from jax.experimental import pallas as pl
from jax.experimental.pallas import tpu as pltpu


def _conv_mm_bias_relu_kernel(w_ref, x_ref, b_ref, o_ref):
    # w_ref: (OC, 9C)  bf16   im2col weight matrix (resident, same every step)
    # x_ref: (9C, TM)  bf16   im2col columns for TM pixels (lane-dense)
    # b_ref: (OC, 1)   f32    conv bias (broadcast over the pixel/lane axis)
    # o_ref: (OC, TM)  f32    conv + bias + ReLU output (lane-dense stores)
    acc = jnp.dot(w_ref[...], x_ref[...], preferred_element_type=jnp.float32)
    acc = acc + b_ref[...]                       # f32 epilogue (v5e-friendly)
    o_ref[...] = jnp.maximum(acc, 0.0).astype(o_ref.dtype)


def _pick_num_tiles(n_pixels, want=2):
    # >= 2 "parallel" grid steps lets v7x's second TensorCore participate;
    # each tile's lane extent must stay a multiple of 128 (unmasked stores).
    if n_pixels % want == 0 and (n_pixels // want) % 128 == 0:
        return want
    return 1


def conv3x3_bias_relu_im2col(x_cols, w_mat, bias):
    """x_cols: (9C, P) f32; w_mat: (OC, 9C) f32; bias: (OC,) -> (OC, P) f32 (ReLU'd)."""
    K, P = x_cols.shape
    OC = w_mat.shape[0]

    g = _pick_num_tiles(P)
    tp = P // g

    x_bf = x_cols.astype(jnp.bfloat16)           # MXU-native operands
    w_bf = w_mat.astype(jnp.bfloat16)
    b2 = bias.reshape(OC, 1).astype(jnp.float32)

    cost = pl.CostEstimate(
        flops=2 * P * K * OC,
        transcendentals=0,
        bytes_accessed=x_bf.size * 2 + w_bf.size * 2 + b2.size * 4 + OC * P * 4,
    )

    return pl.pallas_call(
        _conv_mm_bias_relu_kernel,
        out_shape=jax.ShapeDtypeStruct((OC, P), jnp.float32),
        grid_spec=pltpu.PrefetchScalarGridSpec(
            num_scalar_prefetch=0,
            grid=(g,),
            in_specs=[
                pl.BlockSpec((OC, K), lambda i: (0, 0)),   # weights: resident
                pl.BlockSpec((K, tp), lambda i: (0, i)),   # pixel tile (lane-dense)
                pl.BlockSpec((OC, 1), lambda i: (0, 0)),   # bias: resident
            ],
            out_specs=pl.BlockSpec((OC, tp), lambda i: (0, i)),
        ),
        compiler_params=pltpu.CompilerParams(
            dimension_semantics=("parallel",),
            vmem_limit_bytes=32 * 1024 * 1024,
        ),
        cost_estimate=cost,
    )(w_bf, x_bf, b2)


def upsample_block(x_nchw, w_hwio, bias, scale):
    """UpsampleBlock.forward: (N, C, H, W) -> (N, C, H*scale, W*scale)."""
    N, C, H, W = x_nchw.shape
    r = scale
    OC = C * r * r

    # ---- wrapper-side layout plumbing (XLA) --------------------------------
    # NCHW -> NHWC, 1-px halo pad, and im2col with the *pixel* index last, so
    # the kernel sees a lane-dense (9C, N*H*W) slab. (In an NHWC end-to-end
    # model the boundary transpose disappears; the im2col gather replaces the
    # 9 misaligned in-kernel slices/reshapes of the previous version.)
    x_nhwc = jnp.transpose(x_nchw, (0, 2, 3, 1))
    xp = jnp.pad(x_nhwc, ((0, 0), (1, 1), (1, 1), (0, 0)))
    taps = [xp[:, ky:ky + H, kx:kx + W, :] for ky in range(3) for kx in range(3)]
    x_cols = jnp.stack(taps, axis=0)                   # (9, N, H, W, C)
    x_cols = jnp.transpose(x_cols, (0, 4, 1, 2, 3))    # (9, C, N, H, W)
    x_cols = x_cols.reshape(9 * C, N * H * W)          # row k = (ky*3+kx)*C + c

    w_mat = jnp.transpose(w_hwio.reshape(9 * C, OC))   # (OC, 9C), same k order

    # ---- fused conv + bias + ReLU on the MXU --------------------------------
    y_t = conv3x3_bias_relu_im2col(x_cols, w_mat, bias)  # (OC, N*H*W)

    # ---- PixelShuffle (pure layout; ReLU already applied, it commutes) ------
    y = y_t.reshape(C, r, r, N, H, W)                  # oc = c*r*r + i*r + j
    y = jnp.transpose(y, (3, 0, 4, 1, 5, 2))           # (N, C, H, i, W, j)
    return y.reshape(N, C, H * r, W * r)


def _reference(x_nchw, w_hwio, bias, scale):
    # Pure-JAX reference with the same operand quantization as the kernel
    # (bf16 inputs, f32 accumulation) so a tight tolerance is meaningful.
    xq = x_nchw.astype(jnp.bfloat16).astype(jnp.float32)
    wq = w_hwio.astype(jnp.bfloat16).astype(jnp.float32)
    w_oihw = jnp.transpose(wq, (3, 2, 0, 1))
    y = lax.conv_general_dilated(
        xq, w_oihw, window_strides=(1, 1), padding=((1, 1), (1, 1)),
        dimension_numbers=("NCHW", "OIHW", "NCHW"),
        precision=lax.Precision.HIGHEST)
    y = y + bias[None, :, None, None]
    N, OC, H, W = y.shape
    r = scale
    C = OC // (r * r)
    y = y.reshape(N, C, r, r, H, W)
    y = jnp.transpose(y, (0, 1, 4, 2, 5, 3)).reshape(N, C, H * r, W * r)
    return jnp.maximum(y, 0.0)


if __name__ == "__main__":
    # Small shapes consistent with the module: batch=2, in_channels=4, 16x16, scale=2.
    N, C, H, W = 2, 4, 16, 16
    scale = 2
    OC = C * scale ** 2

    key = jax.random.PRNGKey(0)
    kx, kw, kb = jax.random.split(key, 3)
    x = jax.random.normal(kx, (N, C, H, W), dtype=jnp.float32)

    # Deterministic init matching nn.Conv2d default bounds: U(-1/sqrt(fan_in), +).
    fan_in = C * 3 * 3
    bound = 1.0 / (fan_in ** 0.5)
    w_hwio = jax.random.uniform(kw, (3, 3, C, OC), jnp.float32, -bound, bound)
    bias = jax.random.uniform(kb, (OC,), jnp.float32, -bound, bound)

    fwd = jax.jit(functools.partial(upsample_block, scale=scale))
    out = fwd(x, w_hwio, bias)
    jax.block_until_ready(out)

    ref = _reference(x, w_hwio, bias, scale)
    assert out.shape == (N, C, H * scale, W * scale)
    max_err = float(jnp.max(jnp.abs(out - ref)))
    assert jnp.allclose(out, ref, atol=2e-3, rtol=2e-3), f"max abs err {max_err}"

    print("KERNEL_OK")
</pallas_src>

<mosaic_0001>
module attributes {stable_mosaic.version = 11 : i64} {
  func.func @_conv_mm_bias_relu_kernel(%arg0: i32, %arg1: memref<16x36xbf16, #tpu.memory_space<vmem>>, %arg2: memref<36x256xbf16, #tpu.memory_space<vmem>>, %arg3: memref<16x1xf32, #tpu.memory_space<vmem>>, %arg4: memref<16x256xf32, #tpu.memory_space<vmem>>) attributes {dimension_semantics = [#tpu.dimension_semantics<parallel>], iteration_bounds = array<i64: 2>, scalar_prefetch = 0 : i64, scratch_operands = 0 : i64, tpu.core_type = #tpu.core_type<tc>, window_params = [{pipeline_mode = #tpu.pipeline_mode<synchronous>, transform_indices = @transform_0, window_bounds = array<i64: 16, 36>}, {transform_indices = @transform_1, window_bounds = array<i64: 36, 256>}, {pipeline_mode = #tpu.pipeline_mode<synchronous>, transform_indices = @transform_2, window_bounds = array<i64: 16, 1>}, {transform_indices = @transform_3, window_bounds = array<i64: 16, 256>}]} {
    %c0 = arith.constant 0 : index
    %c0_0 = arith.constant 0 : index
    %0 = vector.load %arg1[%c0, %c0_0] : memref<16x36xbf16, #tpu.memory_space<vmem>>, vector<16x36xbf16>
    %c0_1 = arith.constant 0 : index
    %c0_2 = arith.constant 0 : index
    %1 = vector.load %arg2[%c0_1, %c0_2] : memref<36x256xbf16, #tpu.memory_space<vmem>>, vector<36x256xbf16>
    %cst = arith.constant dense<0.000000e+00> : vector<16x256xf32>
    %2 = tpu.matmul %0, %1, %cst {dimension_numbers = #tpu.dot_dimension_numbers<[1], [0], [0], [1], [0, 0, 1, 1], [], []>} : vector<16x36xbf16>, vector<36x256xbf16>, vector<16x256xf32> -> vector<16x256xf32>
    %c0_3 = arith.constant 0 : index
    %c0_4 = arith.constant 0 : index
    %3 = vector.load %arg3[%c0_3, %c0_4] : memref<16x1xf32, #tpu.memory_space<vmem>>, vector<16x1xf32>
    %4 = vector.broadcast %3 : vector<16x1xf32> to vector<16x256xf32>
    %5 = arith.addf %2, %4 : vector<16x256xf32>
    %cst_5 = arith.constant 0.000000e+00 : f32
    %6 = vector.broadcast %cst_5 : f32 to vector<16x256xf32>
    %7 = arith.maximumf %5, %6 : vector<16x256xf32>
    %c0_6 = arith.constant 0 : index
    %c0_7 = arith.constant 0 : index
    %8 = vector.load %arg4[%c0_6, %c0_7] : memref<16x256xf32, #tpu.memory_space<vmem>>, vector<16x256xf32>
    tpu.vector_store %arg4[%c0_6, %c0_7], %7 {strides = array<i32>} : memref<16x256xf32, #tpu.memory_space<vmem>>, vector<16x256xf32>,
    return
  }
  func.func @transform_0(%arg0: i32) -> (i32, i32) {
    %c0_i32 = arith.constant 0 : i32
    %c0_i32_0 = arith.constant 0 : i32
    %c0_i32_1 = arith.constant 0 : i32
    return %c0_i32, %c0_i32_0 : i32, i32
  }
  func.func @transform_1(%arg0: i32) -> (i32, i32) {
    %c0_i32 = arith.constant 0 : i32
    %c0_i32_0 = arith.constant 0 : i32
    return %c0_i32, %arg0 : i32, i32
  }
  func.func @transform_2(%arg0: i32) -> (i32, i32) {
    %c0_i32 = arith.constant 0 : i32
    %c0_i32_0 = arith.constant 0 : i32
    %c0_i32_1 = arith.constant 0 : i32
    return %c0_i32, %c0_i32_0 : i32, i32
  }
  func.func @transform_3(%arg0: i32) -> (i32, i32) {
    %c0_i32 = arith.constant 0 : i32
    %c0_i32_0 = arith.constant 0 : i32
    return %c0_i32, %arg0 : i32, i32
  }
}

</mosaic_0001>

<bundles_post_ra>
// kernel: upsample_block.1
= control target key start
LH: loop header
LB: loop body
LE: loop exit
PB: predicated region body
PF: predicated region fallthrough
CT: control target
= control target key end

     0   :  { %s525_s12 = smov 0   ;;  %s527_s13 = smov 0   ;;  %s594_s0 = inlined_call_operand.vmem [shape: bf16[16,36], index: 0, kind: input, shape index: {}]   ;;  %s595_s1 = inlined_call_operand.vmem [shape: bf16[36,512], index: 1, kind: input, shape index: {}]   ;;  %s596_s2 = inlined_call_operand.vmem [shape: f32[16,1], index: 2, kind: input, shape index: {}]   ;;  %s597_s3 = inlined_call_operand.vmem [shape: f32[16,512], index: 3, kind: output, shape index: {}]  }
   0x1   :  { %s529_s14 = smov 0  }
   0x2 LB: > { %s419_s15 = sadd.s32 4294967295, %s502_s14   ;;  %s542_s16 = sadd.s32 1, %s502_s14   ;;  %s502_s14 = sphi %s529_s14, %s601_s14   ;;  %s498_s13 = sphi %s527_s13, %s600_s13   ;;  %s494_s12 = sphi %s525_s12, %s599_s12  }
   0x3   : > { %s38_s17 = ssub.s32 %s502_s14, %s542_s16  ;;  %s41_s18 = sadd.s32 1, %s498_s13 }
   0x4   : > { %p39_p0 = scmp.eq.s32.totalorder %s38_s17, 0  ;;  %p48_p1 = scmp.ne.s32.totalorder %s498_s13, %s494_s12 }
   0x5   : > { %p49_p2 = scmp.eq.s32.totalorder %s502_s14, 0  ;;  %p99_p3 = scmp.eq.s32.totalorder %s419_s15, 1 }
   0x6   : > { %s553_s19 = scalar_select %p39_p0, %s498_s13, %s41_s18  }
   0x7   : > { %p50_p4 = por %p49_p2, %p48_p1  ;;  %p555_p5 = por %p99_p3, %p48_p1 }
   0x8   : > { %p422_p6 = scmp.ge.s32.totalorder %s502_s14, 2 }
   0xa   : > { %127 = sbr.rel (%p422_p6) target bundleno = 24 (0x18), region = 24 }
  0x11   : > { %130 = sbr.rel (!%p50_p4) target bundleno = 24 (0x18), region = 28  ;;  %s132_s21 = sand.u32 (%p50_p4), 1, %s498_s13  }
  0x12   : > { %s441_s22 = sshll.u32 (%p50_p4), %s502_s14, 3  ;;  %s443_s23 = smul.u32 (%p50_p4), 40, %s132_s21 }
  0x13   : > { %s137_s26 = scalar_lea.vmem (%p50_p4), %s595_s1, %s441_s22 }
  0x14   : > { %v173_v0 = vld [vmem:[%s137_s26] sm:$0xff] (%p50_p4)  ;;  %v175_v1 = vld [vmem:[%s137_s26 + $0x10] sm:$0xff] (%p50_p4)  ;;  %s134_s27 = scalar_lea.vmem (%p50_p4), [#allocation2], %s443_s23 }
  0x15   : > { %v177_v2 = vld [vmem:[%s137_s26 + $0x20] sm:$0xff] (%p50_p4)  ;;  %v179_v3 = vld [vmem:[%s137_s26 + $0x30] sm:$0xff] (%p50_p4)  ;;  %174 = vst [vmem:[%s134_s27] sm:$0xff] (%p50_p4), %v173_v0  ;;  %176 = vst [vmem:[%s134_s27 + $0x8] sm:$0xff] (%p50_p4), %v175_v1 }
  0x16   : > { %v181_v4 = vld [vmem:[%s137_s26 + $0x40] sm:$0xff] (%p50_p4)  ;;  %178 = vst [vmem:[%s134_s27 + $0x10] sm:$0xff] (%p50_p4), %v177_v2  ;;  %180 = vst [vmem:[%s134_s27 + $0x18] sm:$0xff] (%p50_p4), %v179_v3 }
  0x17   : > { %182 = vst [vmem:[%s134_s27 + $0x20] sm:$0xff] (%p50_p4), %v181_v4 }
  0x18 PF: > { %p425_p7 = scmp.ge.s32.totalorder %s502_s14, 1  ;;  %p187_p8 = scmp.lt.s32.totalorder %s502_s14, 3 }
  0x1a   : > { %p188_p9 = pnand %p425_p7, %p187_p8 }
  0x1b   : > { %s194_s28 = sand.u32 (!%p188_p9), 1, %s494_s12   ;;  %v504_v5 = vmov (!%p188_p9), 0   ;;  %v226_v6 = vld [vmem:[%s596_s2] sm:$0xff] (!%p188_p9)  ;;  %v227_v7 = vld [vmem:[%s596_s2 + $0x8] sm:$0xff] (!%p188_p9)  ;;  %vm272_vm0 = vcmask (!%p188_p9), 1041408   ;;  %vm268_vm1 = vcmask (!%p188_p9), 293888  }
  0x1c   : > { %191 = sbr.rel (%p188_p9) target bundleno = 273 (0x111), region = 66  ;;  %311 = vmatprep.mubr.bf16.mxu0 (!%p188_p9), %v504_v5  ;;  %470 = vset.pattern.permute.xlu0 (!%p188_p9), %v504_v5  ;;  %v479_v16 = vld [vmem:[%s594_s0] sm:$0xff] (!%p188_p9)   ;;  %s426_s10 = sshll.u32 (!%p188_p9), %s194_s28, 5 }
  0x1d   : > { %s444_s29 = smul.u32 (!%p188_p9), 40, %s194_s28  ;;  %230 = vperm.xlu0 (!%p188_p9), %470, %v226_v6   ;;  %s215_s11 = scalar_lea.vmem (!%p188_p9), [#allocation3], %s426_s10 }
  0x1f   : > { %s196_s7 = scalar_lea.vmem (!%p188_p9), [#allocation2], %s444_s29 }
  0x20   : > { %v471_v8 = vld [vmem:[%s196_s7 + $0x4] ss:$8 sps:$4 sm:$0xff] (!%p188_p9)   ;;  %v473_v9 = vld [vmem:[%s196_s7] ss:$8 sps:$4 sm:$0xff] (!%p188_p9)   ;;  %v474_v10 = vld [vmem:[%s196_s7 + $0x14] ss:$8 sps:$4 sm:$0xff] (!%p188_p9)  }
  0x21   : > { %279 = vmatprep.subr.bf16.mxu0 (!%p188_p9), %v471_v8  ;;  %v225_v11 = vld [vmem:[%s196_s7 + $0x20] sm:$0x33] (!%p188_p9)  ;;  %235 = vperm.xlu0 (!%p188_p9), %470, %v227_v7   ;;  %v476_v12 = vld [vmem:[%s196_s7 + $0x10] ss:$8 sps:$4 sm:$0xff] (!%p188_p9)  }
  0x22   : > { %280 = vmatpush1.bf16.msra.mxu0 (!%p188_p9), %v473_v9  ;;  %v433_v13 = vcombine.high (!%p188_p9), %v225_v11, %v225_v11  ;;  %v432_v14 = vcombine.low (!%p188_p9), %v225_v11, %v225_v11 }
  0x23   : > { %281 = vmatprep.subr.bf16.mxu0 %v474_v10  ;;  %s442_s12 = sshll.u32 (%p555_p5), %s419_s15, 4 }
  0x24   : > { %v274_v15 = vsel %vm272_vm0, %v432_v14, 0  ;;  %s339_s21 = scalar_lea.vmem (%p555_p5), %s597_s3, %s442_s12 }
  0x26   : > { %282 = vmatpush1.bf16.msra.mxu0 %v476_v12 }
  0x27   : > { %434 = vmatprep.subr.msk.bf16.mxu0 %vm272_vm0, %v433_v13 }
  0x2a   : > { %284 = vmatpush1.bf16.msra.mxu0 %v274_v15 }
  0x2d   : > { %435 = vmatmul.mubr.msk.bf16.vlgmr.msra.gmra.mrb[0].mxu0 %vm268_vm1, %v479_v16 }
  0x9c   : > { %v231_v17 = vpop.permute.xlu0 %230 }
  0xa0   : > { %v236_v21 = vpop.permute.xlu0 %235 }
 0x100   : > { %v313_v18 = vpop.f32.mrb[0].mxu0 }
 0x101   : > { %v314_v19 = vadd.f32 %v313_v18, %v231_v17  ;;  %v315_v20 = vpop.f32.mrb[1].mxu0 }
 0x102   : > { %v316_v22 = vadd.f32 %v315_v20, %v231_v17  ;;  %v317_v23 = vpop.f32.mrb[2].mxu0  ;;  %336 = sbr.rel (!%p555_p5) target bundleno = 273 (0x111), region = 74 }
 0x103   : > { %v322_v24 = vmax.f32 %v314_v19, 0.0  ;;  %v318_v25 = vadd.f32 %v317_v23, %v236_v21  ;;  %v319_v26 = vpop.f32.mrb[3].mxu0 }
 0x104   : > { %v323_v27 = vmax.f32 %v316_v22, 0.0  ;;  %v320_v28 = vadd.f32 %v319_v26, %v236_v21 }
 0x105   : > { %326 = vst [vmem:[%s215_s11] sm:$0xff] %v322_v24  ;;  %v324_v29 = vmax.f32 %v318_v25, 0.0 }
 0x106   : > { %327 = vst [vmem:[%s215_s11 + $0x8] sm:$0xff] %v323_v27  ;;  %v325_v30 = vmax.f32 %v320_v28, 0.0 }
 0x107   : > { %328 = vst [vmem:[%s215_s11 + $0x10] sm:$0xff] %v324_v29 }
 0x108   : > { %329 = vst [vmem:[%s215_s11 + $0x18] sm:$0xff] %v325_v30 }
 0x10c   : > { %v352_v31 = vld [vmem:[%s215_s11] sm:$0xff] }
 0x10d   : > { %v354_v32 = vld [vmem:[%s215_s11 + $0x8] sm:$0xff]  ;;  %353 = vst [vmem:[%s339_s21] sm:$0xff] %v352_v31 }
 0x10e   : > { %v356_v33 = vld [vmem:[%s215_s11 + $0x10] sm:$0xff]  ;;  %355 = vst [vmem:[%s339_s21 + $0x8] sm:$0xff] %v354_v32 }
 0x10f   : > { %v358_v34 = vld [vmem:[%s215_s11 + $0x18] sm:$0xff]  ;;  %357 = vst [vmem:[%s339_s21 + $0x20] sm:$0xff] %v356_v33 }
 0x110   : > { %359 = vst [vmem:[%s339_s21 + $0x28] sm:$0xff] %v358_v34 }
 0x111 PF: > { %p10_p10 = scmp.ge.s32.totalorder %s542_s16, 4   ;;  %s599_s12 = smov %s498_s13 }
 0x112   : > { %s600_s13 = smov %s553_s19  ;;  %s601_s14 = smov %s542_s16 }
 0x113   :  { %12 = sbr.rel (!%p10_p10) target bundleno = 2 (0x2), region = 128 }

</bundles_post_ra>
